<compile_context>
chip_gen: v5e
topology: v5e:2x2
jax: 0.10.0
libtpu: 0.0.40
codegen_flags: <defaults>
</compile_context>

<pallas_src>
import functools
import math

import jax
import jax.numpy as jnp
from jax.experimental import pallas as pl
from jax.experimental.pallas import tpu as pltpu


# ----------------------------------------------------------------------------
# Kernel 1: fused L2-normalize + mapping-network input projection
# ----------------------------------------------------------------------------
def _norm_project_kernel(x_ref, w_ref, b_ref, o_ref):
    x = x_ref[...]                                              # (B, C) f32
    ss = jnp.sum(x * x, axis=-1, keepdims=True)
    inv = jax.lax.rsqrt(jnp.maximum(ss, 1e-24))                 # eps: no NaN on zero rows
    xn = (x * inv).astype(w_ref.dtype)                          # bf16 at the MXU input
    o_ref[...] = (
        jnp.dot(xn, w_ref[...], preferred_element_type=jnp.float32) + b_ref[...]
    )


def normalize_and_project(x, w_bf16, b_f32):
    B, C = x.shape
    PD = w_bf16.shape[1]
    # Large lane-dense column tiles (multiples of 128) so PD=7680 (real shape)
    # takes 2 grid steps; fall back to smaller divisors / full width.
    tn = PD
    for cand in (3840, 2560, 1920, 1536, 1280, 1024, 768, 640, 512, 384, 256, 128):
        if cand <= PD and PD % cand == 0:
            tn = cand
            break
    return pl.pallas_call(
        _norm_project_kernel,
        out_shape=jax.ShapeDtypeStruct((B, PD), jnp.float32),
        grid=(PD // tn,),
        in_specs=[
            pl.BlockSpec((B, C), lambda j: (0, 0)),
            pl.BlockSpec((C, tn), lambda j: (0, j)),
            pl.BlockSpec((1, tn), lambda j: (0, j)),
        ],
        out_specs=pl.BlockSpec((B, tn), lambda j: (0, j)),
        compiler_params=pltpu.CompilerParams(dimension_semantics=("parallel",)),
    )(x, w_bf16, b_f32)


# ----------------------------------------------------------------------------
# Kernel 2: all mapper transformer layers fused into one kernel.
#   grid = (num_layers,)  ["arbitrary"]  -- weights streamed per layer
#   (int8 + per-column scales by default), activations resident in VMEM
#   scratch as (B, S, D) f32, flattened to (N, D) for the dense matmuls.
#   Layer math (pre-norm, ClipCap style):
#     x = x + Wo(MHA(LN1(x)));  x = x + W2 relu(W1 LN2(x))
# ----------------------------------------------------------------------------
def _mapper_kernel(num_heads, eps,
                   proj_ref, prefix_ref,
                   ln1g, ln1b, wqkv, sqkv, bqkv, wo, swo, bo,
                   ln2g, ln2b, w1, sw1, b1, w2, sw2, b2,
                   out_ref, h_ref):
    B, P, D = proj_ref.shape
    L = prefix_ref.shape[0]
    S = P + L
    N = B * S
    H = num_heads
    hd = D // H

    # Fold the wrapper-side reshape + prefix broadcast + concat into the
    # kernel as vectorized slab copies (no per-batch loops).
    @pl.when(pl.program_id(0) == 0)
    def _():
        h_ref[:, :P, :] = proj_ref[...]
        h_ref[:, P:, :] = jnp.broadcast_to(prefix_ref[...][None, :, :], (B, L, D))

    def layer_norm(v, g, bias):
        mu = jnp.mean(v, axis=-1, keepdims=True)
        var = jnp.mean((v - mu) ** 2, axis=-1, keepdims=True)
        return (v - mu) * jax.lax.rsqrt(var + eps) * g + bias

    x = h_ref[...].reshape(N, D)                                # (N, D) f32, resident

    # ---- multi-head self attention ------------------------------------------
    # Attention scale is folded into the Q columns of wqkv/bqkv at prep time.
    # Weight dequant: int8 -> bf16 feed to the MXU, per-column scale applied to
    # the f32 matmul output (scale is all-ones in the bf16 fallback path).
    xn = layer_norm(x, ln1g[0], ln1b[0]).astype(jnp.bfloat16)
    qkv = (jnp.dot(xn, wqkv[0].astype(jnp.bfloat16),
                   preferred_element_type=jnp.float32) * sqkv[0] + bqkv[0])   # (N, 3D)
    q3 = qkv[:, :D].reshape(B, S, D)
    k3 = qkv[:, D:2 * D].reshape(B, S, D)
    v3 = qkv[:, 2 * D:].reshape(B, S, D)

    # Per-head scores/softmax/context via Mosaic-safe single-batch-dim einsums;
    # head contexts are concatenated and projected with ONE Wo matmul.
    ctx_parts = []
    for h in range(H):
        lo, hi = h * hd, (h + 1) * hd
        s = jnp.einsum("bqd,bkd->bqk", q3[:, :, lo:hi], k3[:, :, lo:hi],
                       preferred_element_type=jnp.float32)       # (B, S, S)
        s = s - jnp.max(s, axis=-1, keepdims=True)
        p = jnp.exp(s)
        p = p / jnp.sum(p, axis=-1, keepdims=True)
        ctx_parts.append(jnp.einsum("bqk,bkd->bqd", p, v3[:, :, lo:hi],
                                    preferred_element_type=jnp.float32))
    ctx = jnp.concatenate(ctx_parts, axis=-1).reshape(N, D)      # (N, D)
    attn = (jnp.dot(ctx.astype(jnp.bfloat16), wo[0].astype(jnp.bfloat16),
                    preferred_element_type=jnp.float32) * swo[0] + bo[0])
    x = x + attn

    # ---- ReLU MLP (mlp_ratio = 2 as in the ClipCap mapper) -------------------
    xn2 = layer_norm(x, ln2g[0], ln2b[0]).astype(jnp.bfloat16)
    hmid = (jnp.dot(xn2, w1[0].astype(jnp.bfloat16),
                    preferred_element_type=jnp.float32) * sw1[0] + b1[0])
    hmid = jnp.maximum(hmid, 0.0).astype(jnp.bfloat16)
    x = x + (jnp.dot(hmid, w2[0].astype(jnp.bfloat16),
                     preferred_element_type=jnp.float32) * sw2[0] + b2[0])

    x3 = x.reshape(B, S, D)
    h_ref[...] = x3
    # Emit only the continuous prompt tokens; written every layer (constant
    # out-block index) so the block's contents are always defined.
    out_ref[...] = x3[:, P:, :]


_STACKED_WEIGHT_NAMES = (
    "ln1_g", "ln1_b", "wqkv", "sqkv", "bqkv", "wo", "swo", "bo",
    "ln2_g", "ln2_b", "w1", "sw1", "b1", "w2", "sw2", "b2",
)


def _nbytes(shape, dtype):
    return math.prod(shape) * jnp.dtype(dtype).itemsize


def mapping_network(proj_tokens, packed, num_heads, eps=1e-5):
    B, P, D = proj_tokens.shape
    L = packed["prefix"].shape[0]
    S = P + L
    num_layers = packed["wqkv"].shape[0]

    w_args = [packed[n] for n in _STACKED_WEIGHT_NAMES]
    w_specs = [pl.BlockSpec((1,) + a.shape[1:], lambda l: (l, 0, 0)) for a in w_args]

    # VMEM budget computed from the packed shapes: double-buffered per-layer
    # weight stream + double-buffered IO blocks + resident activations +
    # headroom for compiler temporaries.  Capped so v7x (64 MiB/TC) keeps slack.
    per_layer_bytes = sum(_nbytes(a.shape[1:], a.dtype) for a in w_args)
    io_bytes = (_nbytes((B, P, D), jnp.float32) + _nbytes((L, D), jnp.float32)
                + _nbytes((B, L, D), jnp.float32))
    act_bytes = _nbytes((B, S, D), jnp.float32)
    vmem_limit = int(2 * per_layer_bytes + 2 * io_bytes + 16 * act_bytes + (16 << 20))
    vmem_limit = min(vmem_limit, 64 << 20)

    kernel = functools.partial(_mapper_kernel, num_heads, eps)
    return pl.pallas_call(
        kernel,
        out_shape=jax.ShapeDtypeStruct((B, L, D), jnp.float32),
        grid=(num_layers,),
        in_specs=[
            pl.BlockSpec((B, P, D), lambda l: (0, 0, 0)),   # projected CLIP tokens
            pl.BlockSpec((L, D), lambda l: (0, 0)),         # learned prefix constants
            *w_specs,
        ],
        out_specs=pl.BlockSpec((B, L, D), lambda l: (0, 0, 0)),
        scratch_shapes=[pltpu.VMEM((B, S, D), jnp.float32)],   # resident activations
        compiler_params=pltpu.CompilerParams(
            dimension_semantics=("arbitrary",),              # layer axis is sequential
            vmem_limit_bytes=vmem_limit,
        ),
    )(proj_tokens, packed["prefix"], *w_args)


# ----------------------------------------------------------------------------
# VieCap.forward (tensor part): normalize -> mapping network -> continuous
# prompt embeddings (the `embeddings` tensor when using_hard_prompt=False).
# ----------------------------------------------------------------------------
def viecap_forward(image_features, packed, cfg):
    B = image_features.shape[0]
    P = cfg["clip_project_length"]
    D = cfg["gpt_hidden_size"]
    proj = normalize_and_project(image_features, packed["map_w"], packed["map_b"])
    proj = proj.reshape(B, P, D)
    # TODO(synk): hard-prompt branch (image_text_similarity + tokenizer) and
    # GPT-2 beam/greedy search are not translatable to a Pallas kernel.
    return mapping_network(proj, packed, cfg["num_heads"])


# ----------------------------------------------------------------------------
# Parameter prep: torch-like per-layer f32 params -> TPU streaming form.
#   * Q/K/V fused into one (D, 3D) matrix, attention scale folded into the
#     Q columns/bias.
#   * Big matrices quantized to int8 with per-column scales (halves the
#     dominant weight-DMA cost); bf16 fallback with all-ones scales.
# ----------------------------------------------------------------------------
def prepare_params(params, num_heads, quantize=True):
    layers = params["layers"]
    D = layers[0]["wq"].shape[0]
    hd = D // num_heads
    attn_scale = float(hd) ** -0.5

    def prep_w(w):
        if quantize:
            amax = jnp.max(jnp.abs(w), axis=0, keepdims=True)
            scale = (jnp.maximum(amax, 1e-8) / 127.0).astype(jnp.float32)
            q = jnp.clip(jnp.round(w / scale), -127.0, 127.0).astype(jnp.int8)
            return q, scale
        return w.astype(jnp.bfloat16), jnp.ones((1, w.shape[1]), jnp.float32)

    row = lambda a: a.reshape(1, -1).astype(jnp.float32)

    per_layer = []
    for lp in layers:
        wqkv = jnp.concatenate([lp["wq"] * attn_scale, lp["wkv"]], axis=1)   # (D, 3D)
        bqkv = jnp.concatenate([lp["bq"] * attn_scale, lp["bkv"]], axis=0)   # (3D,)
        qw, qs = prep_w(wqkv)
        ow, osc = prep_w(lp["wo"])
        w1, s1 = prep_w(lp["w1"])
        w2, s2 = prep_w(lp["w2"])
        per_layer.append(dict(
            ln1_g=row(lp["ln1_g"]), ln1_b=row(lp["ln1_b"]),
            wqkv=qw, sqkv=qs, bqkv=row(bqkv),
            wo=ow, swo=osc, bo=row(lp["bo"]),
            ln2_g=row(lp["ln2_g"]), ln2_b=row(lp["ln2_b"]),
            w1=w1, sw1=s1, b1=row(lp["b1"]),
            w2=w2, sw2=s2, b2=row(lp["b2"]),
        ))

    stacked = {name: jnp.stack([layer[name] for layer in per_layer], axis=0)
               for name in per_layer[0]}
    stacked.update(
        map_w=params["map_linear_w"].astype(jnp.bfloat16),
        map_b=params["map_linear_b"].reshape(1, -1).astype(jnp.float32),
        prefix=params["prefix_const"].astype(jnp.float32),
    )
    return stacked


# ----------------------------------------------------------------------------
# Deterministic synthetic init (shapes follow ClipCaptionModel's MappingNetwork)
# ----------------------------------------------------------------------------
def init_params(key, C, D, P, L, num_layers, mlp_hidden):
    keys = jax.random.split(key, 2 + num_layers)
    params = {
        "map_linear_w": jax.random.normal(keys[0], (C, P * D), jnp.float32) * 0.02,
        "map_linear_b": jnp.zeros((P * D,), jnp.float32),
        "prefix_const": jax.random.normal(keys[1], (L, D), jnp.float32) * 0.02,
    }
    layers = []
    for li in range(num_layers):
        k = jax.random.split(keys[2 + li], 5)
        layers.append(dict(
            ln1_g=jnp.ones((D,), jnp.float32), ln1_b=jnp.zeros((D,), jnp.float32),
            wq=jax.random.normal(k[0], (D, D), jnp.float32) * 0.02,
            bq=jnp.zeros((D,), jnp.float32),
            wkv=jax.random.normal(k[1], (D, 2 * D), jnp.float32) * 0.02,
            bkv=jnp.zeros((2 * D,), jnp.float32),
            wo=jax.random.normal(k[2], (D, D), jnp.float32) * 0.02,
            bo=jnp.zeros((D,), jnp.float32),
            ln2_g=jnp.ones((D,), jnp.float32), ln2_b=jnp.zeros((D,), jnp.float32),
            w1=jax.random.normal(k[3], (D, mlp_hidden), jnp.float32) * 0.02,
            b1=jnp.zeros((mlp_hidden,), jnp.float32),
            w2=jax.random.normal(k[4], (mlp_hidden, D), jnp.float32) * 0.02,
            b2=jnp.zeros((D,), jnp.float32),
        ))
    params["layers"] = layers
    return params


# ----------------------------------------------------------------------------
# Pure-JAX reference (same cast/dequant points as the kernels) for a tight
# correctness check.
# ----------------------------------------------------------------------------
def viecap_reference(image_features, packed, cfg, eps=1e-5):
    P = cfg["clip_project_length"]
    D = cfg["gpt_hidden_size"]
    H = cfg["num_heads"]
    B = image_features.shape[0]
    L = packed["prefix"].shape[0]
    hd = D // H

    x = image_features
    inv = jax.lax.rsqrt(jnp.maximum(jnp.sum(x * x, -1, keepdims=True), 1e-24))
    xn = (x * inv).astype(jnp.bfloat16)
    proj = (jnp.dot(xn, packed["map_w"], preferred_element_type=jnp.float32)
            + packed["map_b"])
    tok = proj.reshape(B, P, D)
    pref = jnp.broadcast_to(packed["prefix"][None], (B, L, D))
    h = jnp.concatenate([tok, pref], axis=1)                    # (B, S, D)
    S = P + L
    N = B * S

    def ln(v, g, b):
        mu = jnp.mean(v, -1, keepdims=True)
        var = jnp.mean((v - mu) ** 2, -1, keepdims=True)
        return (v - mu) * jax.lax.rsqrt(var + eps) * g + b

    deq = lambda w: w.astype(jnp.bfloat16)

    for li in range(packed["wqkv"].shape[0]):
        x2 = h.reshape(N, D)
        xn1 = ln(x2, packed["ln1_g"][li], packed["ln1_b"][li]).astype(jnp.bfloat16)
        qkv = (jnp.dot(xn1, deq(packed["wqkv"][li]),
                       preferred_element_type=jnp.float32)
               * packed["sqkv"][li] + packed["bqkv"][li])
        q3 = qkv[:, :D].reshape(B, S, D)
        k3 = qkv[:, D:2 * D].reshape(B, S, D)
        v3 = qkv[:, 2 * D:].reshape(B, S, D)
        parts = []
        for hh in range(H):
            lo, hi = hh * hd, (hh + 1) * hd
            s = jnp.einsum("bqd,bkd->bqk", q3[..., lo:hi], k3[..., lo:hi],
                           preferred_element_type=jnp.float32)
            s = s - jnp.max(s, -1, keepdims=True)
            p = jnp.exp(s)
            p = p / jnp.sum(p, -1, keepdims=True)
            parts.append(jnp.einsum("bqk,bkd->bqd", p, v3[..., lo:hi],
                                    preferred_element_type=jnp.float32))
        ctx = jnp.concatenate(parts, axis=-1).reshape(N, D)
        attn = (jnp.dot(ctx.astype(jnp.bfloat16), deq(packed["wo"][li]),
                        preferred_element_type=jnp.float32)
                * packed["swo"][li] + packed["bo"][li])
        x2 = x2 + attn
        xn2 = ln(x2, packed["ln2_g"][li], packed["ln2_b"][li]).astype(jnp.bfloat16)
        m1 = (jnp.dot(xn2, deq(packed["w1"][li]),
                      preferred_element_type=jnp.float32)
              * packed["sw1"][li] + packed["b1"][li])
        m1 = jnp.maximum(m1, 0.0).astype(jnp.bfloat16)
        x2 = x2 + (jnp.dot(m1, deq(packed["w2"][li]),
                           preferred_element_type=jnp.float32)
                   * packed["sw2"][li] + packed["b2"][li])
        h = x2.reshape(B, S, D)
    return h[:, P:]


if __name__ == "__main__":
    # Small shapes consistent with the module (real: C=512/640, D=768, P=L=10, 8 layers).
    B = 2           # batch
    C = 32          # clip_hidden_size (synthetic-small)
    D = 64          # gpt_hidden_size (synthetic-small)
    P = 10          # clip_project_length
    L = 10          # continuous_prompt_length
    H = 4           # attention heads in the mapper
    NUM_LAYERS = 2  # mapper transformer depth (real: 8)
    MLP_HIDDEN = 2 * D

    key = jax.random.PRNGKey(0)
    k_feat, k_params = jax.random.split(key)
    image_features = jax.random.normal(k_feat, (B, C), jnp.float32)
    params = init_params(k_params, C, D, P, L, NUM_LAYERS, MLP_HIDDEN)

    cfg = dict(clip_project_length=P, continuous_prompt_length=L,
               gpt_hidden_size=D, num_heads=H)

    # Validate both the bf16 fallback and the default int8-stream path; each
    # is checked against a pure-JAX reference using the same packed weights.
    for quantize in (False, True):
        packed = prepare_params(params, H, quantize=quantize)
        out = jax.block_until_ready(viecap_forward(image_features, packed, cfg))
        assert out.shape == (B, L, D), out.shape
        assert bool(jnp.all(jnp.isfinite(out)))
        ref = jax.block_until_ready(viecap_reference(image_features, packed, cfg))
        err = float(jnp.max(jnp.abs(out - ref)))
        assert err < 1e-2, f"quantize={quantize}: mismatch vs reference: {err}"

    print("KERNEL_OK")
</pallas_src>

<mosaic_0001>
module attributes {stable_mosaic.version = 11 : i64} {
  func.func @_norm_project_kernel(%arg0: i32, %arg1: memref<2x32xf32, #tpu.memory_space<vmem>>, %arg2: memref<32x640xbf16, #tpu.memory_space<vmem>>, %arg3: memref<1x640xf32, #tpu.memory_space<vmem>>, %arg4: memref<2x640xf32, #tpu.memory_space<vmem>>) attributes {dimension_semantics = [#tpu.dimension_semantics<parallel>], iteration_bounds = array<i64: 1>, scalar_prefetch = 0 : i64, scratch_operands = 0 : i64, tpu.core_type = #tpu.core_type<tc>, window_params = [{pipeline_mode = #tpu.pipeline_mode<synchronous>, transform_indices = @transform_0, window_bounds = array<i64: 2, 32>}, {transform_indices = @transform_1, window_bounds = array<i64: 32, 640>}, {transform_indices = @transform_2, window_bounds = array<i64: 1, 640>}, {transform_indices = @transform_3, window_bounds = array<i64: 2, 640>}]} {
    %c0 = arith.constant 0 : index
    %c0_0 = arith.constant 0 : index
    %0 = vector.load %arg1[%c0, %c0_0] : memref<2x32xf32, #tpu.memory_space<vmem>>, vector<2x32xf32>
    %1 = arith.mulf %0, %0 : vector<2x32xf32>
    %cst = arith.constant dense<0.000000e+00> : vector<2xf32>
    %2 = vector.multi_reduction <add>, %1, %cst [1] : vector<2x32xf32> to vector<2xf32>
    %3 = vector.shape_cast %2 : vector<2xf32> to vector<2x1xf32>
    %cst_1 = arith.constant 1.000000e-24 : f32
    %4 = vector.broadcast %cst_1 : f32 to vector<2x1xf32>
    %5 = arith.maximumf %3, %4 : vector<2x1xf32>
    %6 = math.rsqrt %5 : vector<2x1xf32>
    %7 = vector.broadcast %6 : vector<2x1xf32> to vector<2x32xf32>
    %8 = arith.mulf %0, %7 : vector<2x32xf32>
    %9 = arith.truncf %8 : vector<2x32xf32> to vector<2x32xbf16>
    %c0_2 = arith.constant 0 : index
    %c0_3 = arith.constant 0 : index
    %10 = vector.load %arg2[%c0_2, %c0_3] : memref<32x640xbf16, #tpu.memory_space<vmem>>, vector<32x640xbf16>
    %cst_4 = arith.constant dense<0.000000e+00> : vector<2x640xf32>
    %11 = tpu.matmul %9, %10, %cst_4 {dimension_numbers = #tpu.dot_dimension_numbers<[1], [0], [0], [1], [0, 0, 1, 1], [], []>} : vector<2x32xbf16>, vector<32x640xbf16>, vector<2x640xf32> -> vector<2x640xf32>
    %c0_5 = arith.constant 0 : index
    %c0_6 = arith.constant 0 : index
    %12 = vector.load %arg3[%c0_5, %c0_6] : memref<1x640xf32, #tpu.memory_space<vmem>>, vector<1x640xf32>
    %13 = vector.broadcast %12 : vector<1x640xf32> to vector<2x640xf32>
    %14 = arith.addf %11, %13 : vector<2x640xf32>
    %c0_7 = arith.constant 0 : index
    %c0_8 = arith.constant 0 : index
    %15 = vector.load %arg4[%c0_7, %c0_8] : memref<2x640xf32, #tpu.memory_space<vmem>>, vector<2x640xf32>
    tpu.vector_store %arg4[%c0_7, %c0_8], %14 {strides = array<i32>} : memref<2x640xf32, #tpu.memory_space<vmem>>, vector<2x640xf32>,
    return
  }
  func.func @transform_0(%arg0: i32) -> (i32, i32) {
    %c0_i32 = arith.constant 0 : i32
    %c0_i32_0 = arith.constant 0 : i32
    %c0_i32_1 = arith.constant 0 : i32
    return %c0_i32, %c0_i32_0 : i32, i32
  }
  func.func @transform_1(%arg0: i32) -> (i32, i32) {
    %c0_i32 = arith.constant 0 : i32
    %c0_i32_0 = arith.constant 0 : i32
    return %c0_i32, %arg0 : i32, i32
  }
  func.func @transform_2(%arg0: i32) -> (i32, i32) {
    %c0_i32 = arith.constant 0 : i32
    %c0_i32_0 = arith.constant 0 : i32
    return %c0_i32, %arg0 : i32, i32
  }
  func.func @transform_3(%arg0: i32) -> (i32, i32) {
    %c0_i32 = arith.constant 0 : i32
    %c0_i32_0 = arith.constant 0 : i32
    return %c0_i32, %arg0 : i32, i32
  }
}

</mosaic_0001>

<bundles_post_ra>
// kernel: tpu_custom_call.1
= control target key start
LH: loop header
LB: loop body
LE: loop exit
PB: predicated region body
PF: predicated region fallthrough
CT: control target
= control target key end

     0   :  { %8 = vsyncpa [#allocation3], 0  ;;  %s460_s0 = inlined_call_operand.hbm [shape: f32[2,32], index: 0, kind: input, shape index: {}]   ;;  %s461_s1 = inlined_call_operand.hbm [shape: bf16[32,640], index: 1, kind: input, shape index: {}]   ;;  %s462_s2 = inlined_call_operand.hbm [shape: f32[1,640], index: 2, kind: input, shape index: {}]   ;;  %s463_s3 = inlined_call_operand.hbm [shape: f32[2,640], index: 3, kind: output, shape index: {}]  }
   0x1   :  { %9 = vsyncpa [#allocation6], 0  ;;  %s26_s14 = sshll.u32 %s461_s1, 4  ;;  %s27_s14 = int_to_ptr.hbm [resolvable:$true] %s26_s14 }
   0x2   :  { %10 = vsyncpa [#allocation4], 0  ;;  %s422_s15 = smov [#allocation5]   ;;  %s16_s19 = sshll.u32 %s460_s0, 4  ;;  %s17_s19 = int_to_ptr.hbm [resolvable:$true] %s16_s19 }
   0x3   :  { %s28_s16 = sshll.u32 %s422_s15, 4  ;;  %s423_s20 = smov 320   ;;  %s29_s16 = int_to_ptr.vmem [resolvable:$true] %s28_s16 }
   0x4   :  { %s424_s21 = smov 20   ;;  %s425_s22 = smov [#allocation2]  }
   0x5   :  { %34 = dma.hbm_to_vmem [thread:$0]  %s27_s14, 1280, %s29_s16, [#allocation6], %s423_s20, %s423_s20, %s424_s21  }
   0x6   :  { %s18_s23 = sshll.u32 %s425_s22, 4  ;;  %s40_s26 = sshll.u32 %s462_s2, 4  ;;  %s19_s23 = int_to_ptr.vmem [resolvable:$true] %s18_s23  ;;  %s41_s26 = int_to_ptr.hbm [resolvable:$true] %s40_s26 }
   0x7   :  { %21 = dma.hbm_to_vmem [thread:$0]  %s17_s19, 32, %s19_s23, [#allocation3]  }
   0x8   :  { %s426_s1 = smov [#allocation7]  }
   0x9   :  { %s42_s27 = sshll.u32 %s426_s1, 4  ;;  %s43_s27 = int_to_ptr.vmem [resolvable:$true] %s42_s27 }
   0xa   :  { %45 = dma.hbm_to_vmem [thread:$0]  %s41_s26, 80, %s43_s27, [#allocation6]  }
   0xb   :  { %416 = dma.done.wait [#allocation3], 32  }
   0xc   :  { %417 = vsyncadd [#allocation3], 4294967264 }
   0xd   :  { %418 = dma.done.wait [#allocation6], 1360  }
   0xe   :  { %419 = vsyncadd [#allocation6], 4294965936  ;;  %v59_v0 = vld [vmem:[#allocation2] sm:$0x3]  ;;  %vm61_vm0 = vcmask 254976   ;;  %vm154_vm4 = vcmask 261120  }
   0xf   :  { %v60_v1 = vmul.f32 %v59_v0, %v59_v0  ;;  %v279_v3 = vld [vmem:[#allocation5 + $0x28] sm:$0xf]  ;;  %v309_v4 = vld [vmem:[#allocation5 + $0x38] sm:$0xf0]  ;;  %v307_v5 = vld [vmem:[#allocation5 + $0x2c] sm:$0xf] }
  0x10   :  { %v280_v6 = vor.u32 %v309_v4, %v279_v3  ;;  %v281_v7 = vld [vmem:[#allocation5 + $0x3c] sm:$0xf0]  ;;  %v287_v8 = vld [vmem:[#allocation5 + $0x30] sm:$0xf]  ;;  %v310_v9 = vld [vmem:[#allocation5 + $0x40] sm:$0xf0] }
  0x11   :  { %v62_v2 = vsel %vm61_vm0, %v60_v1, 0.0  ;;  %v284_v10 = vor.u32 %v307_v5, %v281_v7  ;;  %v288_v11 = vor.u32 %v310_v9, %v287_v8  ;;  %v308_v12 = vld [vmem:[#allocation5 + $0x34] sm:$0xf]  ;;  %v289_v13 = vld [vmem:[#allocation5 + $0x44] sm:$0xf0]  ;;  %vm230_vm5 = vcmask 1041408  }
  0x12   :  { %63 = vadd.xlane.f32.xlu0 %v62_v2  ;;  %164 = vmatpush.bf16.msra.mxu0 %v280_v6  ;;  %v292_v14 = vor.u32 %v308_v12, %v289_v13  ;;  %v259_v15 = vld [vmem:[#allocation5] sm:$0xf]  ;;  %v304_v16 = vld [vmem:[#allocation5 + $0x10] sm:$0xf0]  ;;  %v302_v17 = vld [vmem:[#allocation5 + $0x4] sm:$0xf] }
  0x13   :  { %177 = vmatpush.bf16.msra.mxu1 %v284_v10  ;;  %190 = vmatpush.bf16.msra.mxu2 %v288_v11  ;;  %v260_v18 = vor.u32 %v304_v16, %v259_v15  ;;  %v261_v19 = vld [vmem:[#allocation5 + $0x14] sm:$0xf0]  ;;  %v267_v20 = vld [vmem:[#allocation5 + $0x8] sm:$0xf]  ;;  %v305_v21 = vld [vmem:[#allocation5 + $0x18] sm:$0xf0] }
  0x14   :  { %203 = vmatpush.bf16.msra.mxu3 %v292_v14  ;;  %v264_v22 = vor.u32 %v302_v17, %v261_v19  ;;  %v268_v23 = vor.u32 %v305_v21, %v267_v20  ;;  %v303_v24 = vld [vmem:[#allocation5 + $0xc] sm:$0xf]  ;;  %v269_v25 = vld [vmem:[#allocation5 + $0x1c] sm:$0xf0]  ;;  %v295_v27 = vld [vmem:[#allocation5 + $0x38] sm:$0xf] }
  0x15   :  { %v272_v26 = vor.u32 %v303_v24, %v269_v25  ;;  %v311_v28 = vld [vmem:[#allocation5 + $0x48] sm:$0xf0]  ;;  %v275_v29 = vld [vmem:[#allocation5 + $0x10] sm:$0xf]  ;;  %v306_v31 = vld [vmem:[#allocation5 + $0x20] sm:$0xf0] }
  0x16   :  { %165 = vmatpush.bf16.msra.mxu0 %v260_v18  ;;  %v296_v30 = vor.u32 %v311_v28, %v295_v27  ;;  %v276_v32 = vor.u32 %v306_v31, %v275_v29  ;;  %v90_v44 = vld [vmem:[#allocation7] sm:$0x1f]  ;;  %vm232_vm6 = vcmask 1045508   ;;  %vm234_vm7 = vcmask 1043456   ;;  %s427_s0 = smov [#allocation8]   ;;  %s246_s30 = sshll.u32 %s463_s3, 4  ;;  %s247_s30 = int_to_ptr.hbm [resolvable:$true] %s246_s30 }
  0x17   :  { %178 = vmatpush.bf16.msra.mxu1 %v264_v22  ;;  %191 = vmatpush.bf16.msra.mxu2 %v268_v23  ;;  %v93_v46 = vperm.slane %v90_v44, 1  ;;  %v94_v49 = vperm.slane %v90_v44, 2  ;;  %v95_v50 = vperm.slane %v90_v44, 3  ;;  %v92_v51 = vperm.slane %v90_v44, 0  ;;  %s244_s2 = sshll.u32 %s427_s0, 4  ;;  %s245_s2 = int_to_ptr.vmem [resolvable:$true] %s244_s2 }
  0x18   :  { %204 = vmatpush.bf16.msra.mxu3 %v272_v26 }
  0x1a   :  { %216 = vmatpush.bf16.msrb.mxu0 %v296_v30 }
  0x1e   :  { %217 = vmatpush.bf16.msrb.mxu0 %v276_v32 }
  0x85   :  { %v64_v33 = vpop.xlane.xlu0 %63 }
  0x86   :  { %v65_v34 = vmax.f32 %v64_v33, 1e-24 }
  0x88   :  { %318 = vrsqrt.f32 %v65_v34  ;;  %vm72_vm2 = vweird.f32 %v65_v34 }
  0x8e   :  { %v319_v35 = vpop.eup %318 }
  0x8f   :  { %v67_v36 = vmul.f32 %v319_v35, %v65_v34  ;;  %vm73_vm1 = vweird.f32 %v319_v35 }
  0x90   :  { %vm74_vm3 = vmor %vm72_vm2, %vm73_vm1 }
  0x91   :  { %v68_v37 = vmul.f32 %v319_v35, %v67_v36 }
  0x93   :  { %v69_v38 = vmul.f32 0.5, %v68_v37 }
  0x95   :  { %v70_v39 = vsub.f32 1.5, %v69_v38 }
  0x97   :  { %v71_v40 = vmul.f32 %v319_v35, %v70_v39 }
  0x99   :  { %v75_v41 = vsel %vm74_vm3, %v319_v35, %v71_v40 }
  0x9a   :  { %v76_v42 = vmul.f32 %v75_v41, %v59_v0  ;;  %v96_v0 = vperm.slane %v90_v44, 4 }
  0x9c   :  { %v77_v43 = vpack.c.bf16 %v76_v42, %v76_v42 }
  0x9e   :  { %297 = vmatmul.msk.bf16.vlgmr.msra.gmra.mxu0 %vm154_vm4, %v77_v43  ;;  %298 = vmatmul.msk.bf16.vlgmr.msra.gmra.mxu1 %vm154_vm4, %v77_v43 }
  0x9f   :  { %299 = vmatmul.msk.bf16.vlgmr.msra.gmra.mxu2 %vm154_vm4, %v77_v43  ;;  %300 = vmatmul.msk.bf16.vlgmr.msra.gmra.mxu3 %vm154_vm4, %v77_v43 }
  0xae   :  { %301 = vmatmul.msk.bf16.vlgmr.msrb.gmra.mxu0 %vm154_vm4, %v77_v43 }
 0x11b   :  { %v167_v45 = vpop.f32.mrf.mxu0  ;;  %v180_v47 = vpop.f32.mrf.mxu1 }
 0x11c   :  { %v181_v48 = vadd.f32 %v180_v47, %v93_v46  ;;  %v168_v59 = vadd.f32 %v167_v45, %v92_v51 }
 0x11e   :  { %v227_v54 = vrot.slane %v181_v48, 6 }
 0x120   :  { %v231_v62 = vsel %vm230_vm5, %v168_v59, %v227_v54 }
 0x122   :  { %v193_v52 = vpop.f32.mrf.mxu2  ;;  %v206_v53 = vpop.f32.mrf.mxu3 }
 0x123   :  { %v194_v55 = vadd.f32 %v193_v52, %v94_v49  ;;  %v207_v56 = vadd.f32 %v206_v53, %v95_v50  ;;  %v169_v57 = vpop.f32.mrf.mxu0  ;;  %v182_v58 = vpop.f32.mrf.mxu1 }
 0x125   :  { %v228_v60 = vrot.slane %v194_v55, 4  ;;  %v229_v61 = vrot.slane %v207_v56, 2 }
 0x127   :  { %v233_v63 = vsel %vm232_vm6, %v228_v60, %v229_v61 }
 0x128   :  { %v235_v1 = vsel %vm234_vm7, %v231_v62, %v233_v63 }
 0x129   :  { %237 = vst [vmem:[#allocation8] sm:$0xff] %v235_v1 }
 0x12a   :  { %v195_v2 = vpop.f32.mrf.mxu2  ;;  %v208_v3 = vpop.f32.mrf.mxu3 }
 0x12b   :  { %v219_v4 = vpop.f32.mrf.mxu0 }
 0x12c   :  { %v220_v5 = vadd.f32 %v219_v4, %v96_v0 }
 0x12e   :  { %238 = vst [vmem:[#allocation8 + $0x8] sm:$0x3] %v220_v5 }
 0x12f   :  { %249 = dma.vmem_to_hbm [thread:$0]  %s245_s2, 160, %s247_s30, [#allocation4]  }
 0x133   :  { %v221_v6 = vpop.f32.mrf.mxu0 }
 0x134   :  { %420 = dma.done.wait [#allocation4], 160  }
 0x135   :  { %421 = vsyncadd [#allocation4], 4294967136 }
 0x136   :  { %254 = vsyncpa [#allocation3], 1 }
 0x137   :  { %255 = vsyncpa [#allocation6], 1 }
 0x138   :  { %256 = vsyncpa [#allocation4], 1 }

</bundles_post_ra>
